<compile_context>
chip_gen: v7x
topology: tpu7x:2x2x1
jax: 0.10.0
libtpu: 0.0.40
codegen_flags: <defaults>
</compile_context>

<pallas_src>
import jax
import jax.numpy as jnp
from jax.experimental import pallas as pl
from jax.experimental.pallas import tpu as pltpu


# ---------------------------------------------------------------------------
# Kernels
# ---------------------------------------------------------------------------

def _se_single_pass_kernel(x_ref, w1_ref, b1_ref, w2_ref, b2_ref, o_ref):
    """(TB, C, HW) slab: pool -> fc1 -> SiLU -> fc2 -> sigmoid -> rescale."""
    x = x_ref[...]                                            # native dtype
    inv_hw = 1.0 / float(x.shape[-1])

    # Squeeze: fp32-accumulated lane-axis reduction (no fp32 copy of the block).
    pooled = jnp.sum(x, axis=-1, dtype=jnp.float32) * inv_hw  # (TB, C)

    # Excitation: 1x1 convs == tiny matmuls, fp32.
    y1 = jnp.dot(pooled, w1_ref[...],
                 preferred_element_type=jnp.float32) + b1_ref[...]
    y1 = y1 * jax.nn.sigmoid(y1)                              # SiLU
    y2 = jnp.dot(y1, w2_ref[...],
                 preferred_element_type=jnp.float32) + b2_ref[...]
    scale = jax.nn.sigmoid(y2).astype(x.dtype)                # (TB, C)

    # Rescale in the input dtype -> lane-dense full-width stores.
    o_ref[...] = (x * scale[:, :, None]).astype(o_ref.dtype)


def _make_pool_fc_kernel(hw_total, hw_chunk):
    """Fallback pass 1: accumulate the spatial sum over HW chunks; on the last
    chunk run the FC stack and emit the per-channel gate (shape (1, 1, C))."""
    ragged = (hw_total % hw_chunk) != 0
    inv_hw = 1.0 / float(hw_total)

    def kernel(x_ref, w1_ref, b1_ref, w2_ref, b2_ref, scale_ref, acc_ref):
        h = pl.program_id(1)

        @pl.when(h == 0)
        def _():
            acc_ref[...] = jnp.zeros_like(acc_ref)

        x = x_ref[...]                                        # (1, C, hw_chunk)
        if ragged:
            # Only the final chunk is ragged; its padded lanes hold garbage.
            col = jax.lax.broadcasted_iota(jnp.int32, x.shape, dimension=2)
            valid = hw_total - h * hw_chunk
            x = jnp.where(col < valid, x, jnp.zeros_like(x))
        acc_ref[...] += jnp.sum(x, axis=-1, dtype=jnp.float32)   # (1, C)

        @pl.when(h == pl.num_programs(1) - 1)
        def _():
            pooled = acc_ref[...] * inv_hw                    # (1, C), fp32
            y1 = jnp.dot(pooled, w1_ref[...],
                         preferred_element_type=jnp.float32) + b1_ref[...]
            y1 = y1 * jax.nn.sigmoid(y1)                      # SiLU
            y2 = jnp.dot(y1, w2_ref[...],
                         preferred_element_type=jnp.float32) + b2_ref[...]
            scale_ref[...] = jax.nn.sigmoid(y2)[None]         # (1, 1, C)

    return kernel


def _rescale_kernel(x_ref, scale_ref, o_ref):
    """Fallback pass 2: streaming channel-wise rescale, chunked over HW."""
    x = x_ref[...]                                            # (1, C, hw_chunk)
    s = scale_ref[...].astype(x.dtype)                        # (1, C, 1)
    o_ref[...] = (x * s).astype(o_ref.dtype)


# ---------------------------------------------------------------------------
# Planning helpers
# ---------------------------------------------------------------------------

def _vmem_capacity_bytes():
    try:
        cap = int(pltpu.get_tpu_info().vmem_capacity_bytes)
        if cap > 0:
            return cap
    except Exception:
        pass
    return 64 << 20   # conservative default == v7x per-TensorCore VMEM


def _clamp(v, lo, hi):
    return int(min(max(v, lo), hi))


def _pick_tb(B, per_row_bytes, target_block_bytes):
    """Rows-per-block for the single-pass path: block <= target, grid >= 4 steps
    (>= 2 per v7x TensorCore) when the batch allows, TB sublane-aligned, and an
    even grid length when that costs at most one aligned step."""
    tb = max(1, min(B, int(target_block_bytes // per_row_bytes)))
    if B >= 4:
        tb = max(1, min(tb, B // 4))              # grid >= 4 steps when possible
    if tb >= 8:
        tb -= tb % 8                              # sublane-align the M dimension
        grid = -(-B // tb)
        if grid % 2 == 1 and tb - 8 >= 8 and (-(-B // (tb - 8))) % 2 == 0:
            tb -= 8                               # nudge to an even grid
    return tb


# ---------------------------------------------------------------------------
# Wrapper
# ---------------------------------------------------------------------------

def squeeze_excitation(x, w1, b1, w2, b2, *, single_pass_budget_bytes=None):
    """SqueezeExcitation forward.

    x:  (B, C, H, W)  NCHW
    w1: (hidden, C, 1, 1), b1: (hidden,)   -- fc1 (Conv2d 1x1)
    w2: (C, hidden, 1, 1), b2: (C,)        -- fc2 (Conv2d 1x1)
    single_pass_budget_bytes: planning-budget override (used to force / test the
    two-pass fallback); the hardware VMEM ceiling is still respected.
    """
    B, C, H, W = x.shape
    hidden = w1.shape[0]
    HW = H * W

    # Glue: flatten spatial dims (metadata-only for contiguous NCHW) so the lane
    # dim is large; squeeze the 1x1 conv kernels into pre-transposed matrices.
    x3 = x.reshape(B, C, HW)
    w1_t = jnp.transpose(w1.reshape(hidden, C))   # (C, hidden)
    w2_t = jnp.transpose(w2.reshape(C, hidden))   # (hidden, C)
    b1_2d = b1.reshape(1, hidden)
    b2_2d = b2.reshape(1, C)

    itemsize = jnp.dtype(x.dtype).itemsize
    per_row_bytes = C * HW * itemsize             # one batch row (C, HW)
    weight_bytes = sum(int(a.size) * jnp.dtype(a.dtype).itemsize
                       for a in (w1_t, b1_2d, w2_t, b2_2d))
    margin = 2 << 20

    # VMEM budget from the actual chip (128 MiB on v5e/v6e, 64 MiB/TC on v7x).
    hw_budget = int(0.75 * _vmem_capacity_bytes())
    plan_budget = hw_budget if single_pass_budget_bytes is None \
        else min(int(single_pass_budget_bytes), hw_budget)

    # Mem-bound kernel: bigger blocks buy HBM roofline (~85% at >= 4 MiB). 8 MiB
    # blocks double-buffered on both input and output stay ~32 MiB -> safe on v7x.
    target_block = min(8 << 20,
                       max(0, (plan_budget - 2 * weight_bytes - margin) // 4))

    if per_row_bytes <= target_block:
        # ------------------------- single-pass path -------------------------
        TB = _pick_tb(B, per_row_bytes, target_block)
        grid = (pl.cdiv(B, TB),)
        block_bytes = TB * per_row_bytes
        vmem_limit = _clamp(4 * block_bytes + 2 * weight_bytes + margin,
                            16 << 20, hw_budget)
        # TODO(synk): if xprof shows exposed DMA gaps on v5e/v6e, add
        # pipeline_mode=pl.Buffered(3) on the x/out specs (skip on v7x).
        out3 = pl.pallas_call(
            _se_single_pass_kernel,
            out_shape=jax.ShapeDtypeStruct((B, C, HW), x.dtype),
            grid_spec=pltpu.PrefetchScalarGridSpec(
                num_scalar_prefetch=0,
                grid=grid,
                in_specs=[
                    pl.BlockSpec((TB, C, HW), lambda b: (b, 0, 0)),
                    pl.BlockSpec((C, hidden), lambda b: (0, 0)),
                    pl.BlockSpec((1, hidden), lambda b: (0, 0)),
                    pl.BlockSpec((hidden, C), lambda b: (0, 0)),
                    pl.BlockSpec((1, C), lambda b: (0, 0)),
                ],
                out_specs=pl.BlockSpec((TB, C, HW), lambda b: (b, 0, 0)),
            ),
            compiler_params=pltpu.CompilerParams(
                dimension_semantics=("parallel",),
                vmem_limit_bytes=vmem_limit,
            ),
        )(x3, w1_t, b1_2d, w2_t, b2_2d)
    else:
        # -------------------- two-pass HW-tiled fallback --------------------
        hw_chunk = max(1, int(plan_budget // (4 * C * itemsize)))
        hw_chunk = max(128, (hw_chunk // 128) * 128)   # lane-aligned chunks
        hw_chunk = min(hw_chunk, HW)
        n_hw = pl.cdiv(HW, hw_chunk)
        chunk_bytes = C * hw_chunk * itemsize

        # Pass 1: per-batch-row gate = sigmoid(fc2(silu(fc1(mean(x))))).
        vmem1 = _clamp(2 * chunk_bytes + 2 * weight_bytes + margin,
                       16 << 20, hw_budget)
        scale = pl.pallas_call(
            _make_pool_fc_kernel(HW, hw_chunk),
            out_shape=jax.ShapeDtypeStruct((B, 1, C), jnp.float32),
            grid_spec=pltpu.PrefetchScalarGridSpec(
                num_scalar_prefetch=0,
                grid=(B, n_hw),
                in_specs=[
                    pl.BlockSpec((1, C, hw_chunk), lambda b, h: (b, 0, h)),
                    pl.BlockSpec((C, hidden), lambda b, h: (0, 0)),
                    pl.BlockSpec((1, hidden), lambda b, h: (0, 0)),
                    pl.BlockSpec((hidden, C), lambda b, h: (0, 0)),
                    pl.BlockSpec((1, C), lambda b, h: (0, 0)),
                ],
                out_specs=pl.BlockSpec((1, 1, C), lambda b, h: (b, 0, 0)),
                scratch_shapes=[pltpu.VMEM((1, C), jnp.float32)],
            ),
            compiler_params=pltpu.CompilerParams(
                dimension_semantics=("parallel", "arbitrary"),
                vmem_limit_bytes=vmem1,
            ),
        )(x3, w1_t, b1_2d, w2_t, b2_2d)

        # Tiny wrapper-side relayout (B*C elems) so pass 2 gets a per-sublane
        # (channel) gate it can broadcast along lanes with no in-kernel xpose.
        scale_col = scale.reshape(B, C, 1)

        # Pass 2: streaming channel-wise rescale.
        vmem2 = _clamp(4 * chunk_bytes + margin, 16 << 20, hw_budget)
        out3 = pl.pallas_call(
            _rescale_kernel,
            out_shape=jax.ShapeDtypeStruct((B, C, HW), x.dtype),
            grid_spec=pltpu.PrefetchScalarGridSpec(
                num_scalar_prefetch=0,
                grid=(B, n_hw),
                in_specs=[
                    pl.BlockSpec((1, C, hw_chunk), lambda b, h: (b, 0, h)),
                    pl.BlockSpec((1, C, 1), lambda b, h: (b, 0, 0)),
                ],
                out_specs=pl.BlockSpec((1, C, hw_chunk), lambda b, h: (b, 0, h)),
            ),
            compiler_params=pltpu.CompilerParams(
                dimension_semantics=("parallel", "parallel"),
                vmem_limit_bytes=vmem2,
            ),
        )(x3, scale_col)

    return out3.reshape(B, C, H, W)


# ---------------------------------------------------------------------------
# Test harness
# ---------------------------------------------------------------------------

if __name__ == "__main__":
    def reference(x, w1, b1, w2, b2):
        """Pure-JAX reference matching the PyTorch forward."""
        B, C, H, W = x.shape
        hidden = w1.shape[0]
        y = jnp.mean(x.astype(jnp.float32), axis=(2, 3))          # avgpool -> (B, C)
        y = y @ w1.reshape(hidden, C).T + b1                      # fc1
        y = y * jax.nn.sigmoid(y)                                 # SiLU
        y = jax.nn.sigmoid(y @ w2.reshape(C, hidden).T + b2)      # fc2 + sigmoid
        return x * y.astype(x.dtype)[:, :, None, None]

    def make_inputs(key, B, C, H, W, hidden):
        kx, k1, k2, k3, k4 = jax.random.split(key, 5)
        x = jax.random.normal(kx, (B, C, H, W), dtype=jnp.float32)
        w1 = jax.random.normal(k1, (hidden, C, 1, 1), dtype=jnp.float32) * 0.1
        b1 = jax.random.normal(k2, (hidden,), dtype=jnp.float32) * 0.1
        w2 = jax.random.normal(k3, (C, hidden, 1, 1), dtype=jnp.float32) * 0.1
        b2 = jax.random.normal(k4, (C,), dtype=jnp.float32) * 0.1
        return x, w1, b1, w2, b2

    key = jax.random.PRNGKey(0)
    k_a, k_b, k_c = jax.random.split(key, 3)

    # 1) Single-pass path (the common case).
    args_a = make_inputs(k_a, B=2, C=32, H=16, W=16, hidden=8)
    out_a = jax.block_until_ready(squeeze_excitation(*args_a))
    ref_a = reference(*args_a)
    assert out_a.shape == args_a[0].shape
    assert jnp.allclose(out_a, ref_a, atol=1e-5, rtol=1e-5)

    # 2) Two-pass HW-tiled fallback, forced via a tiny planning budget, with a
    #    ragged final HW chunk (HW=160, chunk=128) -> exercises chunked pooling,
    #    tail masking, and the streaming rescale pass.
    args_b = make_inputs(k_b, B=2, C=32, H=16, W=10, hidden=8)
    out_b = jax.block_until_ready(
        squeeze_excitation(*args_b, single_pass_budget_bytes=1 << 16))
    ref_b = reference(*args_b)
    assert jnp.allclose(out_b, ref_b, atol=1e-5, rtol=1e-5)

    # 3) Single-pass path with a ragged final batch block (B=9, TB=2 -> grid 5).
    args_c = make_inputs(k_c, B=9, C=16, H=8, W=8, hidden=4)
    out_c = jax.block_until_ready(squeeze_excitation(*args_c))
    ref_c = reference(*args_c)
    assert jnp.allclose(out_c, ref_c, atol=1e-5, rtol=1e-5)

    print("KERNEL_OK")
</pallas_src>

<mosaic_0001>
module attributes {stable_mosaic.version = 11 : i64} {
  func.func @_se_single_pass_kernel(%arg0: i32, %arg1: memref<2x32x256xf32, #tpu.memory_space<vmem>>, %arg2: memref<32x8xf32, #tpu.memory_space<vmem>>, %arg3: memref<1x8xf32, #tpu.memory_space<vmem>>, %arg4: memref<8x32xf32, #tpu.memory_space<vmem>>, %arg5: memref<1x32xf32, #tpu.memory_space<vmem>>, %arg6: memref<2x32x256xf32, #tpu.memory_space<vmem>>) attributes {dimension_semantics = [#tpu.dimension_semantics<parallel>], iteration_bounds = array<i64: 1>, scalar_prefetch = 0 : i64, scratch_operands = 0 : i64, tpu.core_type = #tpu.core_type<tc>, window_params = [{transform_indices = @transform_0, window_bounds = array<i64: 2, 32, 256>}, {pipeline_mode = #tpu.pipeline_mode<synchronous>, transform_indices = @transform_1, window_bounds = array<i64: 32, 8>}, {pipeline_mode = #tpu.pipeline_mode<synchronous>, transform_indices = @transform_2, window_bounds = array<i64: 1, 8>}, {pipeline_mode = #tpu.pipeline_mode<synchronous>, transform_indices = @transform_3, window_bounds = array<i64: 8, 32>}, {pipeline_mode = #tpu.pipeline_mode<synchronous>, transform_indices = @transform_4, window_bounds = array<i64: 1, 32>}, {transform_indices = @transform_5, window_bounds = array<i64: 2, 32, 256>}]} {
    %c0 = arith.constant 0 : index
    %c0_0 = arith.constant 0 : index
    %c0_1 = arith.constant 0 : index
    %0 = vector.load %arg1[%c0, %c0_0, %c0_1] : memref<2x32x256xf32, #tpu.memory_space<vmem>>, vector<2x32x256xf32>
    %cst = arith.constant dense<0.000000e+00> : vector<2x32xf32>
    %1 = vector.multi_reduction <add>, %0, %cst [2] : vector<2x32x256xf32> to vector<2x32xf32>
    %cst_2 = arith.constant 3.906250e-03 : f32
    %2 = vector.broadcast %cst_2 : f32 to vector<2x32xf32>
    %3 = arith.mulf %1, %2 : vector<2x32xf32>
    %c0_3 = arith.constant 0 : index
    %c0_4 = arith.constant 0 : index
    %4 = vector.load %arg2[%c0_3, %c0_4] : memref<32x8xf32, #tpu.memory_space<vmem>>, vector<32x8xf32>
    %cst_5 = arith.constant dense<0.000000e+00> : vector<2x8xf32>
    %5 = tpu.matmul %3, %4, %cst_5 {dimension_numbers = #tpu.dot_dimension_numbers<[1], [0], [0], [1], [0, 0, 1, 1], [], []>} : vector<2x32xf32>, vector<32x8xf32>, vector<2x8xf32> -> vector<2x8xf32>
    %c0_6 = arith.constant 0 : index
    %c0_7 = arith.constant 0 : index
    %6 = vector.load %arg3[%c0_6, %c0_7] : memref<1x8xf32, #tpu.memory_space<vmem>>, vector<1x8xf32>
    %7 = vector.broadcast %6 : vector<1x8xf32> to vector<2x8xf32>
    %8 = arith.addf %5, %7 : vector<2x8xf32>
    %9 = arith.negf %8 : vector<2x8xf32>
    %10 = math.exp %9 : vector<2x8xf32>
    %cst_8 = arith.constant 1.000000e+00 : f32
    %11 = vector.broadcast %cst_8 : f32 to vector<2x8xf32>
    %12 = arith.addf %11, %10 : vector<2x8xf32>
    %13 = arith.divf %11, %12 : vector<2x8xf32>
    %14 = arith.mulf %8, %13 : vector<2x8xf32>
    %c0_9 = arith.constant 0 : index
    %c0_10 = arith.constant 0 : index
    %15 = vector.load %arg4[%c0_9, %c0_10] : memref<8x32xf32, #tpu.memory_space<vmem>>, vector<8x32xf32>
    %cst_11 = arith.constant dense<0.000000e+00> : vector<2x32xf32>
    %16 = tpu.matmul %14, %15, %cst_11 {dimension_numbers = #tpu.dot_dimension_numbers<[1], [0], [0], [1], [0, 0, 1, 1], [], []>} : vector<2x8xf32>, vector<8x32xf32>, vector<2x32xf32> -> vector<2x32xf32>
    %c0_12 = arith.constant 0 : index
    %c0_13 = arith.constant 0 : index
    %17 = vector.load %arg5[%c0_12, %c0_13] : memref<1x32xf32, #tpu.memory_space<vmem>>, vector<1x32xf32>
    %18 = vector.broadcast %17 : vector<1x32xf32> to vector<2x32xf32>
    %19 = arith.addf %16, %18 : vector<2x32xf32>
    %20 = arith.negf %19 : vector<2x32xf32>
    %21 = math.exp %20 : vector<2x32xf32>
    %cst_14 = arith.constant 1.000000e+00 : f32
    %22 = vector.broadcast %cst_14 : f32 to vector<2x32xf32>
    %23 = arith.addf %22, %21 : vector<2x32xf32>
    %24 = arith.divf %22, %23 : vector<2x32xf32>
    %25 = vector.shape_cast %24 : vector<2x32xf32> to vector<2x32x1xf32>
    %26 = vector.broadcast %25 : vector<2x32x1xf32> to vector<2x32x256xf32>
    %27 = arith.mulf %0, %26 : vector<2x32x256xf32>
    %c0_15 = arith.constant 0 : index
    %c0_16 = arith.constant 0 : index
    %c0_17 = arith.constant 0 : index
    %28 = vector.load %arg6[%c0_15, %c0_16, %c0_17] : memref<2x32x256xf32, #tpu.memory_space<vmem>>, vector<2x32x256xf32>
    tpu.vector_store %arg6[%c0_15, %c0_16, %c0_17], %27 {strides = array<i32>} : memref<2x32x256xf32, #tpu.memory_space<vmem>>, vector<2x32x256xf32>,
    return
  }
  func.func @transform_0(%arg0: i32) -> (i32, i32, i32) {
    %c0_i32 = arith.constant 0 : i32
    %c0_i32_0 = arith.constant 0 : i32
    %c0_i32_1 = arith.constant 0 : i32
    return %arg0, %c0_i32, %c0_i32_0 : i32, i32, i32
  }
  func.func @transform_1(%arg0: i32) -> (i32, i32) {
    %c0_i32 = arith.constant 0 : i32
    %c0_i32_0 = arith.constant 0 : i32
    %c0_i32_1 = arith.constant 0 : i32
    return %c0_i32, %c0_i32_0 : i32, i32
  }
  func.func @transform_2(%arg0: i32) -> (i32, i32) {
    %c0_i32 = arith.constant 0 : i32
    %c0_i32_0 = arith.constant 0 : i32
    %c0_i32_1 = arith.constant 0 : i32
    return %c0_i32, %c0_i32_0 : i32, i32
  }
  func.func @transform_3(%arg0: i32) -> (i32, i32) {
    %c0_i32 = arith.constant 0 : i32
    %c0_i32_0 = arith.constant 0 : i32
    %c0_i32_1 = arith.constant 0 : i32
    return %c0_i32, %c0_i32_0 : i32, i32
  }
  func.func @transform_4(%arg0: i32) -> (i32, i32) {
    %c0_i32 = arith.constant 0 : i32
    %c0_i32_0 = arith.constant 0 : i32
    %c0_i32_1 = arith.constant 0 : i32
    return %c0_i32, %c0_i32_0 : i32, i32
  }
  func.func @transform_5(%arg0: i32) -> (i32, i32, i32) {
    %c0_i32 = arith.constant 0 : i32
    %c0_i32_0 = arith.constant 0 : i32
    %c0_i32_1 = arith.constant 0 : i32
    return %arg0, %c0_i32, %c0_i32_0 : i32, i32, i32
  }
}

</mosaic_0001>

<bundles_post_ra>
// kernel: tpu_custom_call.1
= control target key start
LH: loop header
LB: loop body
LE: loop exit
PB: predicated region body
PF: predicated region fallthrough
CT: control target
= control target key end

     0   :  { %10 = vsyncpa [#allocation3], 0  ;;  %s663_s0 = inlined_call_operand.hbm [shape: f32[2,32,256], index: 0, kind: input, shape index: {}]   ;;  %s664_s1 = inlined_call_operand.vmem [shape: f32[32,8], index: 1, kind: input, shape index: {}]   ;;  %s665_s2 = inlined_call_operand.vmem [shape: f32[1,8], index: 2, kind: input, shape index: {}]   ;;  %s666_s3 = inlined_call_operand.vmem [shape: f32[8,32], index: 3, kind: input, shape index: {}]   ;;  %s667_s4 = inlined_call_operand.vmem [shape: f32[1,32], index: 4, kind: input, shape index: {}]   ;;  %s668_s5 = inlined_call_operand.hbm [shape: f32[2,32,256], index: 5, kind: output, shape index: {}]  }
   0x1   :  { %11 = vsyncpa [#allocation4], 0  ;;  %s503_s18 = smov [#allocation2]   ;;  %s455_s22 = scalar_lea.hbm %s663_s0, 2048 }
   0x2   :  { %s17_s19 = sshll.u32 %s503_s18, 4  ;;  %p456_p0 = scmp.ne.s32.totalorder %s663_s0, %s455_s22  ;;  %s18_s19 = int_to_ptr.vmem [resolvable:$true] %s17_s19 }
   0x3   :  { %p459_p1 = scmp.lt.u32.totalorder %s455_s22, %s663_s0 }
   0x5   :  { %p461_p2 = pnand %p459_p1, %p456_p0 }
   0x7   :  { %464 = shalt.err (!%p461_p2)
}
   0x8   :  { %s465_s27 = scalar_lea.vmem %s18_s19, 2048  ;;  %p470_p4 = scmp.lt.s32.totalorder %s18_s19, %s18_s19 }
   0x9   :  { %p466_p3 = scmp.ne.s32.totalorder %s18_s19, %s465_s27  ;;  %p471_p5 = scmp.lt.s32.totalorder %s465_s27, %s465_s27 }
   0xb   :  { %p472_p6 = por %p471_p5, %p470_p4 }
   0xd   :  { %p473_p7 = pnand %p472_p6, %p466_p3 }
   0xf   :  { %476 = shalt.err (!%p473_p7)
}
  0x10   :  { %s504_s28 = smov 256   ;;  %s505_s29 = smov 16  }
  0x11   :  { %23 = dma.hbm_to_vmem [thread:$0]  %s663_s0, 2048, %s18_s19, [#allocation3], %s504_s28, %s504_s28, %s505_s29  }
  0x12   :  { %499 = dma.done.wait [#allocation3], 2048  }
  0x13   :  { %500 = vsyncadd [#allocation3], 4294965248  ;;  %v555_v0 = vld [vmem:[#allocation2 + $0x40] sm:$0xff]  ;;  %v557_v1 = vld [vmem:[#allocation2 + $0x48] sm:$0xff]  ;;  %v506_v27 = vmov 0.0|0.0   ;;  %vm507_vm0 = vmmov 0   ;;  %v102_v32 = vlaneseq }
  0x14   :  { %v559_v2 = vld [vmem:[#allocation2] sm:$0xff]  ;;  %v63_v3 = vadd.f32 %v557_v1, %v555_v0  ;;  %v563_v4 = vld [vmem:[#allocation2 + $0x8] sm:$0xff]  ;;  %v565_v5 = vld [vmem:[#allocation2 + $0x50] sm:$0xff]  ;;  %434 = vmatprep.subr.bf16.mxu0 %v506_v27  ;;  %v508_v31 = vmov 0.0   ;;  %vm113_vm1 = vcmask 130112   ;;  %vm120_vm2 = vcmask 195712  }
  0x15   :  { %v567_v6 = vld [vmem:[#allocation2 + $0x58] sm:$0xff]  ;;  %v51_v7 = vadd.f32 %v563_v4, %v559_v2  ;;  %v571_v8 = vld [vmem:[#allocation2 + $0x10] sm:$0xff]  ;;  %v579_v12 = vld [vmem:[#allocation2 + $0x60] sm:$0xff]  ;;  %426 = vmatprep.mubr.msk.f32.mxu0 %vm507_vm0, %v508_v31  ;;  %429 = vmatprep.subr.mxu1 %v508_v31  ;;  %v103_v34 = vand.u32 127, %v102_v32  ;;  %v615_v39 = vshrl.u32 %v102_v32, 7  ;;  %vm127_vm3 = vcmask 261312  }
  0x16   :  { %v573_v9 = vld [vmem:[#allocation2 + $0x18] sm:$0xff]  ;;  %64 = vadd.xlane.f32.xlu1 %v63_v3  ;;  %v66_v10 = vadd.f32 %v567_v6, %v565_v5  ;;  %v581_v13 = vld [vmem:[#allocation2 + $0x68] sm:$0xff]  ;;  %v583_v14 = vld [vmem:[#allocation2 + $0x20] sm:$0xff]  ;;  %431 = vmatprep.mubr.msk.f32.mxu1 %vm507_vm0, %v508_v31  ;;  %vm148_vm4 = vcmask 1041409   ;;  %vm150_vm5 = vcmask 261120   ;;  %vm238_vm6 = vcmask 64512  }
  0x17   :  { %52 = vadd.xlane.f32.xlu0 %v51_v7  ;;  %v54_v11 = vadd.f32 %v573_v9, %v571_v8  ;;  %v585_v15 = vld [vmem:[#allocation2 + $0x28] sm:$0xff]  ;;  %v69_v16 = vadd.f32 %v581_v13, %v579_v12  ;;  %v591_v18 = vld [vmem:[#allocation2 + $0x70] sm:$0xff]  ;;  %v593_v19 = vld [vmem:[#allocation2 + $0x78] sm:$0xff]  ;;  %v108_v36 = vadd.s32 4294967288, %v103_v34  ;;  %v115_v38 = vadd.s32 4294967280, %v103_v34 }
  0x18   :  { %v57_v17 = vadd.f32 %v585_v15, %v583_v14  ;;  %v595_v20 = vld [vmem:[#allocation2 + $0x30] sm:$0xff]  ;;  %v597_v21 = vld [vmem:[#allocation2 + $0x38] sm:$0xff]  ;;  %v72_v22 = vadd.f32 %v593_v19, %v591_v18  ;;  %v83_v24 = vld [vmem:[%s664_s1] sm:$0xff]  ;;  %v122_v43 = vadd.s32 4294967272, %v103_v34  ;;  %v106_v47 = vsub.s32 %v103_v34, %v615_v39 }
  0x19   :  { %v60_v23 = vadd.f32 %v597_v21, %v595_v20  ;;  %v84_v25 = vld [vmem:[%s664_s1 + $0x8] sm:$0xff]  ;;  %v85_v28 = vld [vmem:[%s664_s1 + $0x10] sm:$0xff]  ;;  %v86_v29 = vld [vmem:[%s664_s1 + $0x18] sm:$0xff]  ;;  %v111_v41 = vsub.s32 %v108_v36, %v615_v39  ;;  %v118_v45 = vsub.s32 %v115_v38, %v615_v39 }
  0x1a   :  { %67 = vadd.xlane.f32.xlu1 %v66_v10  ;;  %v435_v26 = vpack.c.bf16 %v84_v25, %v83_v24  ;;  %v438_v30 = vpack.c.bf16 %v86_v29, %v85_v28  ;;  %v125_v54 = vsub.s32 %v122_v43, %v615_v39  ;;  %v230_v25 = vld [vmem:[%s666_s3] sm:$0xff]  ;;  %v320_v43 = vsub.s32 0, %v615_v39 }
  0x1b   :  { %55 = vadd.xlane.f32.xlu0 %v54_v11  ;;  %430 = vmatpush3.msra.mxu1 %v230_v25 }
  0x1c   :  { %436 = vmatpush3.bf16.msra.mxu0 %v435_v26  ;;  %v405_v26 = vld [vmem:[%s665_s2] ss:$0 sm:$0xff]  ;;  %s509_s2 = smov [#allocation5]  }
  0x1d   :  { %437 = vmatprep.subr.bf16.mxu0 %v506_v27  ;;  %s393_s3 = sshll.u32 %s509_s2, 4  ;;  %s394_s3 = int_to_ptr.vmem [resolvable:$true] %s393_s3 }
  0x1e   :  { %70 = vadd.xlane.f32.xlu1 %v69_v16  ;;  %p482_p9 = scmp.lt.s32.totalorder %s394_s3, %s394_s3 }
  0x1f   :  { %58 = vadd.xlane.f32.xlu0 %v57_v17 }
  0x20   :  { %439 = vmatpush3.bf16.msra.mxu0 %v438_v30 }
  0x22   :  { %73 = vadd.xlane.f32.xlu1 %v72_v22 }
  0x23   :  { %61 = vadd.xlane.f32.xlu0 %v60_v23 }
  0xa3   :  { %v65_v33 = vpop.xlane.xlu1 %64 }
  0xa4   :  { %v53_v35 = vpop.xlane.xlu0 %52  ;;  %v79_v48 = vmul.f32 0.00390625, %v65_v33 }
  0xa5   :  { %v75_v51 = vmul.f32 0.00390625, %v53_v35  ;;  %v408_v35 = vld [vmem:[%s667_s4] ss:$0 sm:$0xff]  ;;  %s477_s4 = scalar_lea.vmem %s394_s3, 2048 }
  0xa6   :  { %v132_v58 = vrot.slane %v79_v48, %v106_v47  ;;  %p478_p8 = scmp.ne.s32.totalorder %s394_s3, %s477_s4  ;;  %p483_p10 = scmp.lt.s32.totalorder %s477_s4, %s477_s4 }
  0xa7   :  { %v68_v37 = vpop.xlane.xlu1 %67  ;;  %v107_v62 = vrot.slane %v75_v51, %v106_v47 }
  0xa8   :  { %v56_v40 = vpop.xlane.xlu0 %55  ;;  %v80_v42 = vmul.f32 0.00390625, %v68_v37  ;;  %p484_p11 = por %p483_p10, %p482_p9 }
  0xa9   :  { %v76_v44 = vmul.f32 0.00390625, %v56_v40 }
  0xaa   :  { %v136_v53 = vrot.slane %v80_v42, %v111_v41  ;;  %p485_p12 = pnand %p484_p11, %p478_p8 }
  0xab   :  { %v71_v46 = vpop.xlane.xlu1 %70  ;;  %v112_v55 = vrot.slane %v76_v44, %v111_v41 }
  0xac   :  { %v81_v49 = vmul.f32 0.00390625, %v71_v46  ;;  %v59_v50 = vpop.xlane.xlu0 %58  ;;  %v137_v3 = vsel %vm113_vm1, %v136_v53, %v132_v58  ;;  %v339_v46 = vsub.s32 1, %v615_v39 }
  0xad   :  { %v77_v52 = vmul.f32 0.00390625, %v59_v50  ;;  %v114_v10 = vsel %vm113_vm1, %v112_v55, %v107_v62 }
  0xae   :  { %v141_v56 = vrot.slane %v81_v49, %v118_v45 }
  0xaf   :  { %v74_v57 = vpop.xlane.xlu1 %73  ;;  %v119_v59 = vrot.slane %v77_v52, %v118_v45 }
  0xb0   :  { %v82_v60 = vmul.f32 0.00390625, %v74_v57  ;;  %v62_v61 = vpop.xlane.xlu0 %61  ;;  %v142_v11 = vsel %vm120_vm2, %v141_v56, %v137_v3 }
  0xb1   :  { %v78_v63 = vmul.f32 0.00390625, %v62_v61  ;;  %v121_v17 = vsel %vm120_vm2, %v119_v59, %v114_v10 }
  0xb2   :  { %v146_v7 = vrot.slane %v82_v60, %v125_v54 }
  0xb3   :  { %v126_v16 = vrot.slane %v78_v63, %v125_v54 }
  0xb4   :  { %v147_v22 = vsel %vm127_vm3, %v146_v7, %v142_v11 }
  0xb5   :  { %v128_v23 = vsel %vm127_vm3, %v126_v16, %v121_v17 }
  0xb6   :  { %v149_v24 = vsel %vm148_vm4, %v147_v22, %v128_v23 }
  0xb7   :  { %427 = vmatmul.mubr.msk.f32.vlgmr.msra.gmra.mrb[0].mxu0 %vm150_vm5, %v149_v24 }
 0x18a   :  { %v219_v27 = vpop.f32.mrb[0].mxu0 }
 0x18b   :  { %v220_v28 = vadd.f32 %v405_v26, %v219_v27  ;;  %v428_v29 = vpop.f32.mrb[1].mxu0 }
 0x18d   :  { %v407_v30 = vmul.f32 -1.442695, %v220_v28 }
 0x18f   :  { %447 = vpow2.f32 %v407_v30 }
 0x199   :  { %v448_v31 = vpop.eup %447 }
 0x19a   :  { %v226_v32 = vadd.f32 1.0, %v448_v31 }
 0x19c   :  { %449 = vrcp.f32 %v226_v32 }
 0x1a6   :  { %v450_v33 = vpop.eup %449 }
 0x1a7   :  { %v229_v34 = vmul.f32 %v450_v33, %v220_v28 }
 0x1a9   :  { %432 = vmatmul.mubr.msk.f32.vlgmr.msra.gmra.mrb[0].mxu1 %vm238_vm6, %v229_v34 }
 0x27c   :  { %v308_v36 = vpop.f32.mrb[0].mxu1 }
 0x27d   :  { %v309_v37 = vadd.f32 %v408_v35, %v308_v36  ;;  %v433_v38 = vpop.f32.mrb[1].mxu1 }
 0x27f   :  { %v410_v40 = vmul.f32 -1.442695, %v309_v37 }
 0x281   :  { %451 = vpow2.f32 %v410_v40 }
 0x28b   :  { %v452_v41 = vpop.eup %451 }
 0x28c   :  { %v315_v42 = vadd.f32 1.0, %v452_v41 }
 0x28e   :  { %453 = vrcp.f32 %v315_v42 }
 0x298   :  { %v454_v44 = vpop.eup %453 }
 0x299   :  { %v321_v45 = vrot.slane %v454_v44, %v320_v43  ;;  %v340_v47 = vrot.slane %v454_v44, %v339_v46 }
 0x29b   :  { %327 = vbcast.lane.b32.xlu1 %v321_v45, 264  ;;  %323 = vbcast.lane.b32.xlu0 %v321_v45, 256 }
 0x29f   :  { %331 = vbcast.lane.b32.xlu1 %v321_v45, 272  ;;  %342 = vbcast.lane.b32.xlu0 %v340_v47, 256 }
 0x2a3   :  { %335 = vbcast.lane.b32.xlu1 %v321_v45, 280  ;;  %350 = vbcast.lane.b32.xlu0 %v340_v47, 272 }
 0x2a7   :  { %346 = vbcast.lane.b32.xlu1 %v340_v47, 264 }
 0x2ab   :  { %354 = vbcast.lane.b32.xlu1 %v340_v47, 280 }
 0x30d   :  { %v328_v48 = vpop.permute.xlu1 %327  ;;  %v324_v49 = vpop.permute.xlu0 %323 }
 0x30e   :  { %v358_v50 = vmul.f32 %v328_v48, %v571_v8  ;;  %v359_v51 = vmul.f32 %v328_v48, %v573_v9  ;;  %v356_v52 = vmul.f32 %v324_v49, %v559_v2  ;;  %v357_v53 = vmul.f32 %v324_v49, %v563_v4 }
 0x310   :  { %374 = vst [vmem:[#allocation5 + $0x10] sm:$0xff] %v358_v50  ;;  %375 = vst [vmem:[#allocation5 + $0x18] sm:$0xff] %v359_v51 }
 0x311   :  { %372 = vst [vmem:[#allocation5] sm:$0xff] %v356_v52  ;;  %373 = vst [vmem:[#allocation5 + $0x8] sm:$0xff] %v357_v53  ;;  %v332_v39 = vpop.permute.xlu1 %331  ;;  %v343_v54 = vpop.permute.xlu0 %342 }
 0x312   :  { %v360_v55 = vmul.f32 %v332_v39, %v583_v14  ;;  %v361_v56 = vmul.f32 %v332_v39, %v585_v15  ;;  %v364_v57 = vmul.f32 %v343_v54, %v555_v0  ;;  %v365_v8 = vmul.f32 %v343_v54, %v557_v1 }
 0x314   :  { %376 = vst [vmem:[#allocation5 + $0x20] sm:$0xff] %v360_v55  ;;  %377 = vst [vmem:[#allocation5 + $0x28] sm:$0xff] %v361_v56 }
 0x315   :  { %380 = vst [vmem:[#allocation5 + $0x40] sm:$0xff] %v364_v57  ;;  %381 = vst [vmem:[#allocation5 + $0x48] sm:$0xff] %v365_v8  ;;  %v336_v2 = vpop.permute.xlu1 %335  ;;  %v351_v4 = vpop.permute.xlu0 %350 }
 0x316   :  { %v362_v9 = vmul.f32 %v336_v2, %v595_v20  ;;  %v363_v58 = vmul.f32 %v336_v2, %v597_v21  ;;  %v368_v59 = vmul.f32 %v351_v4, %v579_v12  ;;  %v369_v14 = vmul.f32 %v351_v4, %v581_v13 }
 0x318   :  { %378 = vst [vmem:[#allocation5 + $0x30] sm:$0xff] %v362_v9  ;;  %379 = vst [vmem:[#allocation5 + $0x38] sm:$0xff] %v363_v58 }
 0x319   :  { %384 = vst [vmem:[#allocation5 + $0x60] sm:$0xff] %v368_v59  ;;  %385 = vst [vmem:[#allocation5 + $0x68] sm:$0xff] %v369_v14  ;;  %v347_v0 = vpop.permute.xlu1 %346 }
 0x31a   :  { %v366_v1 = vmul.f32 %v347_v0, %v565_v5  ;;  %v367_v15 = vmul.f32 %v347_v0, %v567_v6 }
 0x31c   :  { %382 = vst [vmem:[#allocation5 + $0x50] sm:$0xff] %v366_v1  ;;  %383 = vst [vmem:[#allocation5 + $0x58] sm:$0xff] %v367_v15 }
 0x31d   :  { %v355_v20 = vpop.permute.xlu1 %354 }
 0x31e   :  { %v370_v21 = vmul.f32 %v355_v20, %v591_v18  ;;  %v371_v12 = vmul.f32 %v355_v20, %v593_v19 }
 0x320   :  { %386 = vst [vmem:[#allocation5 + $0x70] sm:$0xff] %v370_v21  ;;  %387 = vst [vmem:[#allocation5 + $0x78] sm:$0xff] %v371_v12 }
 0x321   :  { %488 = shalt.err (!%p485_p12)
}
 0x322   :  { %s489_s21 = scalar_lea.hbm %s668_s5, 2048 }
 0x323   :  { %p490_p13 = scmp.ne.s32.totalorder %s668_s5, %s489_s21  ;;  %p493_p0 = scmp.lt.u32.totalorder %s489_s21, %s668_s5 }
 0x325   :  { %p495_p1 = pnand %p493_p0, %p490_p13 }
 0x327   :  { %498 = shalt.err (!%p495_p1)
}
 0x328   :  { %399 = dma.vmem_to_hbm [thread:$0]  %s394_s3, 2048, %s668_s5, [#allocation4], %s504_s28, %s504_s28, %s505_s29  }
 0x329   :  { %501 = dma.done.wait [#allocation4], 2048  }
 0x32a   :  { %502 = vsyncadd [#allocation4], 4294965248 }
 0x32b   :  { %403 = vsyncpa [#allocation3], 1 }
 0x32c   :  { %404 = vsyncpa [#allocation4], 1 }

</bundles_post_ra>
